<compile_context>
chip_gen: v7x
topology: tpu7x:2x2x1
jax: 0.10.0
libtpu: 0.0.40
codegen_flags: <defaults>
</compile_context>

<pallas_src>
import jax
import jax.numpy as jnp
import numpy as np
from jax.experimental import pallas as pl
from jax.experimental.pallas import tpu as pltpu


def _rotary_concat_kernel(x_ref, tab_ref, o_ref):
    # x_ref:   (tile_r, D)      input feature rows
    # tab_ref: (tile_r, 4)      precomputed [sin(pos), cos(pos), sin(row), cos(row)]
    # o_ref:   (tile_r, D + 4)  output rows
    x = x_ref[...]
    tab = tab_ref[...].astype(o_ref.dtype)
    # Single full-tile store. If the Mosaic dump ever shows an extra VMEM copy
    # for the concat, switch to two sub-view stores:
    #   o_ref[:, :D] = x ; o_ref[:, D:] = tab
    # (the bulk D-wide store of x stays lane-unshifted either way).
    o_ref[...] = jnp.concatenate([x, tab], axis=-1)


def _pad_lanes(n):
    """Round last-dim width up to a full 128-lane vreg row (VMEM footprint)."""
    return ((n + 127) // 128) * 128


def _build_pos_table(S, max_freq):
    """(S, 4) float32 table of [sin(pos), cos(pos), sin(row), cos(row)]."""
    scale = 2.0 * np.pi / max_freq
    pos = jnp.arange(S, dtype=jnp.float32)[:, None] * scale
    mf = float(max_freq)
    if mf.is_integer():
        # Exact match to torch.long // int max_freq for any S.
        row = (jnp.arange(S, dtype=jnp.int32) // int(mf)).astype(jnp.float32)
    else:
        # TODO(synk): confirm torch's `long // float` promotion if max_freq can be non-integer.
        row = jnp.floor(jnp.arange(S, dtype=jnp.float32) / mf)
    row = row[:, None] * scale
    return jnp.concatenate(
        [jnp.sin(pos), jnp.cos(pos), jnp.sin(row), jnp.cos(row)], axis=-1
    )  # (S, 4) float32


def rotary_embedding(x, max_freq, *, target_block_bytes=4 * 1024 * 1024):
    """Pallas TPU implementation of RotaryEmbedding.forward."""
    B, S, D = x.shape
    R = B * S
    itemsize = jnp.dtype(x.dtype).itemsize

    # Sublane packing per dtype (f32 -> 8, bf16 -> 16, int8/fp8 -> 32).
    sublane = {4: 8, 2: 16, 1: 32}.get(itemsize, 8)

    # VMEM bytes per output row, counting 128-lane padding of the last dims.
    # Table is always streamed as float32.
    row_bytes = (_pad_lanes(D) + _pad_lanes(D + 4)) * itemsize + _pad_lanes(4) * 4

    # Adaptive row tile: ~target_block_bytes per buffered set, multiple of the
    # sublane pack, or the full row count (full-extent blocks are always legal).
    tile_r = max(sublane, target_block_bytes // row_bytes)
    if tile_r >= R:
        tile_r = R
    else:
        tile_r = max(sublane, (tile_r // sublane) * sublane)

    # Double-buffered working set -> explicit scoped-VMEM limit with headroom,
    # clamped to be safe on v5e (16 MiB default) and v7x (64 MiB physical).
    working_set = 2 * tile_r * row_bytes
    vmem_limit = int(min(max(2 * working_set + (1 << 20), 16 << 20), 48 << 20))

    # Precompute the tiny table once; tile over batch so row r uses tab[r % S].
    table = jnp.tile(_build_pos_table(S, max_freq), (B, 1))  # (B*S, 4) float32

    x2 = x.reshape(R, D)
    grid = (pl.cdiv(R, tile_r),)

    cost = pl.CostEstimate(
        flops=0,
        transcendentals=0,
        bytes_accessed=int(
            R * D * itemsize          # read x
            + R * 4 * 4               # read table (f32)
            + R * (D + 4) * itemsize  # write out
        ),
    )

    out2 = pl.pallas_call(
        _rotary_concat_kernel,
        out_shape=jax.ShapeDtypeStruct((R, D + 4), x.dtype),
        grid=grid,
        in_specs=[
            pl.BlockSpec((tile_r, D), lambda r: (r, 0)),
            pl.BlockSpec((tile_r, 4), lambda r: (r, 0)),
        ],
        out_specs=pl.BlockSpec((tile_r, D + 4), lambda r: (r, 0)),
        compiler_params=pltpu.CompilerParams(
            dimension_semantics=("parallel",),
            vmem_limit_bytes=vmem_limit,
        ),
        cost_estimate=cost,
    )(x2, table)

    return out2.reshape(B, S, D + 4)


def _rotary_ref(x, max_freq):
    """Pure-JAX reference mirroring the PyTorch module."""
    B, S, D = x.shape
    combined = _build_pos_table(S, max_freq)  # (S, 4) float32
    return jnp.concatenate(
        [x, jnp.broadcast_to(combined[None], (B, S, 4)).astype(x.dtype)], axis=-1
    )


if __name__ == "__main__":
    key = jax.random.PRNGKey(0)
    B, S, D = 2, 8, 32
    max_freq = 4

    x = jax.random.normal(key, (B, S, D), dtype=jnp.float32)

    out = rotary_embedding(x, max_freq)
    out = jax.block_until_ready(out)

    ref = _rotary_ref(x, max_freq)
    assert out.shape == (B, S, D + 4), out.shape
    assert jnp.allclose(out, ref, atol=1e-5), "mismatch vs reference"

    print("KERNEL_OK")
</pallas_src>

<mosaic_0001>
module attributes {stable_mosaic.version = 11 : i64} {
  func.func @_rotary_concat_kernel(%arg0: i32, %arg1: memref<16x32xf32, #tpu.memory_space<vmem>>, %arg2: memref<16x4xf32, #tpu.memory_space<vmem>>, %arg3: memref<16x36xf32, #tpu.memory_space<vmem>>) attributes {dimension_semantics = [#tpu.dimension_semantics<parallel>], iteration_bounds = array<i64: 1>, scalar_prefetch = 0 : i64, scratch_operands = 0 : i64, tpu.core_type = #tpu.core_type<tc>, window_params = [{transform_indices = @transform_0, window_bounds = array<i64: 16, 32>}, {transform_indices = @transform_1, window_bounds = array<i64: 16, 4>}, {transform_indices = @transform_2, window_bounds = array<i64: 16, 36>}]} {
    %c0 = arith.constant 0 : index
    %c0_0 = arith.constant 0 : index
    %0 = vector.load %arg1[%c0, %c0_0] : memref<16x32xf32, #tpu.memory_space<vmem>>, vector<16x32xf32>
    %c0_1 = arith.constant 0 : index
    %c0_2 = arith.constant 0 : index
    %1 = vector.load %arg2[%c0_1, %c0_2] : memref<16x4xf32, #tpu.memory_space<vmem>>, vector<16x4xf32>
    %2 = tpu.concatenate %0, %1 in 1 : vector<16x32xf32>, vector<16x4xf32> -> vector<16x36xf32>
    %c0_3 = arith.constant 0 : index
    %c0_4 = arith.constant 0 : index
    %3 = vector.load %arg3[%c0_3, %c0_4] : memref<16x36xf32, #tpu.memory_space<vmem>>, vector<16x36xf32>
    tpu.vector_store %arg3[%c0_3, %c0_4], %2 {strides = array<i32>} : memref<16x36xf32, #tpu.memory_space<vmem>>, vector<16x36xf32>,
    return
  }
  func.func @transform_0(%arg0: i32) -> (i32, i32) {
    %c0_i32 = arith.constant 0 : i32
    %c0_i32_0 = arith.constant 0 : i32
    return %arg0, %c0_i32 : i32, i32
  }
  func.func @transform_1(%arg0: i32) -> (i32, i32) {
    %c0_i32 = arith.constant 0 : i32
    %c0_i32_0 = arith.constant 0 : i32
    return %arg0, %c0_i32 : i32, i32
  }
  func.func @transform_2(%arg0: i32) -> (i32, i32) {
    %c0_i32 = arith.constant 0 : i32
    %c0_i32_0 = arith.constant 0 : i32
    return %arg0, %c0_i32 : i32, i32
  }
}

</mosaic_0001>

<bundles_post_ra>
// kernel: tpu_custom_call.1
= control target key start
LH: loop header
LB: loop body
LE: loop exit
PB: predicated region body
PF: predicated region fallthrough
CT: control target
= control target key end

     0   :  { %s74_s11 = smov 32   ;;  %s117_s0 = inlined_call_operand.vmem [shape: f32[16,32], index: 0, kind: input, shape index: {}]   ;;  %s118_s1 = inlined_call_operand.vmem [shape: f32[16,4], index: 1, kind: input, shape index: {}]   ;;  %s119_s2 = inlined_call_operand.hbm [shape: f32[16,36], index: 2, kind: output, shape index: {}]  }
   0x1   :  { %v14_v0 = vld [vmem:[%s118_s1] sm:$0xff] }
   0x2   :  { %18 = vrot.lane.b32.xlu0 %v14_v0, %s74_s11 }
   0x3   :  { %7 = vsyncpa [#allocation3], 0  ;;  %v15_v1 = vld [vmem:[%s118_s1 + $0x8] sm:$0xff]  ;;  %vm24_vm0 = vcmask 261120   ;;  %v12_v2 = vld [vmem:[%s117_s0] sm:$0xff]  ;;  %vm27_vm1 = vcmask 293888  }
   0x4   :  { %s75_s16 = smov [#allocation2]   ;;  %v13_v5 = vld [vmem:[%s117_s0 + $0x8] sm:$0xff] }
   0x5   :  { %s35_s17 = sshll.u32 %s75_s16, 4  ;;  %s36_s17 = int_to_ptr.vmem [resolvable:$true] %s35_s17 }
   0x6   :  { %20 = vrot.lane.b32.xlu0 %v15_v1, %s74_s11  ;;  %s50_s1 = scalar_lea.vmem %s36_s17, 256  ;;  %p55_p1 = scmp.lt.s32.totalorder %s36_s17, %s36_s17 }
   0x7   :  { %p51_p0 = scmp.ne.s32.totalorder %s36_s17, %s50_s1  ;;  %p56_p2 = scmp.lt.s32.totalorder %s50_s1, %s50_s1 }
   0x9   :  { %p57_p3 = por %p56_p2, %p55_p1 }
   0xb   :  { %p58_p4 = pnand %p57_p3, %p51_p0 }
  0x74   :  { %v19_v3 = vpop.permute.xlu0 %18 }
  0x75   :  { %v25_v4 = vsel %vm24_vm0, %v12_v2, %v19_v3 }
  0x76   :  { %28 = vst.msk [vmem:[#allocation2] sm:$0xff] %vm27_vm1, %v25_v4 }
  0x78   :  { %v21_v6 = vpop.permute.xlu0 %20 }
  0x79   :  { %v26_v7 = vsel %vm24_vm0, %v13_v5, %v21_v6 }
  0x7a   :  { %29 = vst.msk [vmem:[#allocation2 + $0x8] sm:$0xff] %vm27_vm1, %v26_v7 }
  0x7b   :  { %61 = shalt.err (!%p58_p4)
}
  0x7c   :  { %s62_s22 = scalar_lea.hbm %s119_s2, 256 }
  0x7d   :  { %p63_p5 = scmp.ne.s32.totalorder %s119_s2, %s62_s22  ;;  %p66_p6 = scmp.lt.u32.totalorder %s62_s22, %s119_s2 }
  0x7f   :  { %p68_p7 = pnand %p66_p6, %p63_p5 }
  0x81   :  { %71 = shalt.err (!%p68_p7)
}
  0x82   :  { %s76_s26 = smov 128   ;;  %s77_s27 = smov 8  }
  0x83   :  { %41 = dma.vmem_to_hbm [thread:$0]  %s36_s17, 256, %s119_s2, [#allocation3], %s76_s26, %s76_s26, %s77_s27  }
  0x84   :  { %72 = dma.done.wait [#allocation3], 256  }
  0x85   :  { %73 = vsyncadd [#allocation3], 4294967040 }
  0x86   :  { %45 = vsyncpa [#allocation3], 1 }

</bundles_post_ra>
